<compile_context>
chip_gen: v5e
topology: v5e:2x2
jax: 0.10.0
libtpu: 0.0.40
codegen_flags: <defaults>
</compile_context>

<pallas_src>
import functools
import math

import jax
import jax.numpy as jnp
from jax.experimental import pallas as pl
from jax.experimental.pallas import tpu as pltpu


def _dsconv_kernel(x_ref, w_ref, mask_ref, bias_ref, o_ref, *,
                   cin_g, cout_t, k, w, tw, s, activation):
    # x_ref:    (1, cin_g, Cout_t, HWp)  zero-padded, channel-replicated input
    # w_ref:    (Cout_t, cin_g*k*k)      BN-scale-folded grouped-conv weights
    # mask_ref: (k, tw + (k-1)*w)        per-kw column-validity masks (0/1)
    # bias_ref: (Cout_t, 1)              folded BN bias
    # o_ref:    (1, Cout_t, tw)          output tile (lane-dense)
    ext = tw + (k - 1) * w
    t = pl.program_id(2)
    start = t * tw
    if tw % 128 == 0:
        start = pl.multiple_of(start, 128)   # 128-lane-aligned dynamic slice

    wts = w_ref[...]                         # (Cout_t, cin_g*k*k) f32
    masks = mask_ref[...]                    # (k, ext) f32

    n_acc = 2 if cin_g * k * k >= 4 else 1   # interleaved accumulators
    accs = [jnp.zeros((cout_t, tw), jnp.float32) for _ in range(n_acc)]

    j = 0
    for ci in range(cin_g):
        # One dynamic (aligned) slice per input channel: tile plus its halo.
        xwin = x_ref[0, ci, :, pl.ds(start, tw + 2 * s)].astype(jnp.float32)
        # k column-shifted + masked planes; the kh offsets below reuse them
        # (k plane builds instead of k*k masked windows).
        colps = [xwin[:, kw:kw + ext] * masks[kw:kw + 1, :] for kw in range(k)]
        for kh in range(k):
            for kw in range(k):
                tap = (ci * k + kh) * k + kw
                win = colps[kw][:, kh * w:kh * w + tw]      # (Cout_t, tw)
                # Channel-parallel FMA: (Cout_t,1) weight splat x (Cout_t,tw).
                accs[j % n_acc] = accs[j % n_acc] + wts[:, tap:tap + 1] * win
                j += 1

    acc = accs[0]
    for a in accs[1:]:
        acc = acc + a

    y = acc + bias_ref[...]                  # folded eval-mode BN bias
    if activation:
        y = y * jax.nn.sigmoid(y)            # SiLU
    o_ref[0] = y.astype(o_ref.dtype)         # single lane-dense store


def depthwise_separable_conv(x, weight, gamma, beta, running_mean, running_var,
                             *, stride=1, eps=1e-5, activation=True,
                             row_tile=None, cout_tile=None):
    """Forward of DepthwiseSeparableConv: grouped conv -> eval-mode BN -> SiLU."""
    assert stride == 1, "TODO(synk): stride > 1 not implemented"
    n, cin, h, w = x.shape
    cout, cin_g, k, k2 = weight.shape
    assert k == k2 and k % 2 == 1, "odd square kernels only (padding = k//2)"
    assert cin % cin_g == 0
    groups = cin // cin_g
    assert cout % groups == 0
    cout_per_g = cout // groups
    pad = k // 2
    hw = h * w

    # ---- tile selection ---------------------------------------------------
    if row_tile is None:
        cands = [th for th in range(1, h + 1)
                 if h % th == 0 and (th * w) % 128 == 0]
        good = [th for th in cands if th * w <= 2048]
        row_tile = max(good) if good else (min(cands) if cands else h)
    th = row_tile
    tw = th * w
    assert h % th == 0 and (tw % 128 == 0 or tw == hw)

    if cout_tile is None:
        cands = [c for c in range(8, min(cout, 256) + 1, 8) if cout % c == 0]
        cout_tile = max(cands) if cands else cout
    ct = cout_tile
    assert cout % ct == 0 and (ct % 8 == 0 or ct == cout)

    # ---- host-side prep (plain XLA ops) -------------------------------------
    s = pad * w + pad                        # flattened halo on each side
    hwp = hw + 2 * s
    ext = tw + (k - 1) * w

    # Channel-replicated, zero-padded, flattened input:
    #   xg[n, ci, o, :] = x[n, group(o)*cin_g + ci, :]   (zero halo of s each side)
    # Replication factor is cout/groups (== 1 for true depthwise).
    oc = jnp.arange(cout)
    gather_idx = (oc[None, :] // cout_per_g) * cin_g + jnp.arange(cin_g)[:, None]
    xg = x.reshape(n, cin, hw)[:, gather_idx, :]          # (n, cin_g, cout, hw)
    xg = jnp.pad(xg, ((0, 0), (0, 0), (0, 0), (s, s)))    # (n, cin_g, cout, hwp)

    # Fold eval-mode BN scale into the conv weights; bias stays separate.
    scale = (gamma.astype(jnp.float32) /
             jnp.sqrt(running_var.astype(jnp.float32) + eps))
    bias = (beta.astype(jnp.float32) -
            running_mean.astype(jnp.float32) * scale).reshape(cout, 1)
    wf = weight.astype(jnp.float32).reshape(cout, cin_g * k * k) * scale[:, None]

    # Per-kw column-validity masks over the extended (kh-reusable) planes.
    col = jnp.arange(ext) % w
    masks = jnp.stack(
        [(((col + (kw - pad)) >= 0) & ((col + (kw - pad)) < w))
         for kw in range(k)], axis=0).astype(jnp.float32)   # (k, ext)

    # ---- VMEM budget derived from tile sizes (v7x has only 64 MiB) ----------
    in_b = xg.dtype.itemsize
    out_b = x.dtype.itemsize
    vmem_need = (2 * cin_g * ct * hwp * in_b                 # input block (x2 buf)
                 + 2 * ct * tw * out_b                       # output tile (x2 buf)
                 + 2 * (ct * cin_g * k * k + ct + k * ext) * 4
                 + (k + 4) * ct * (tw + 2 * s) * 4)          # col planes + accs
    vmem_limit = int(min(48 * 2 ** 20, max(16 * 2 ** 20, 4 * vmem_need)))

    kernel = functools.partial(
        _dsconv_kernel, cin_g=cin_g, cout_t=ct, k=k, w=w, tw=tw, s=s,
        activation=activation)

    out_flat = pl.pallas_call(
        kernel,
        out_shape=jax.ShapeDtypeStruct((n, cout, hw), x.dtype),
        grid=(n, cout // ct, hw // tw),
        in_specs=[
            pl.BlockSpec((1, cin_g, ct, hwp), lambda b, c, t: (b, 0, c, 0)),
            pl.BlockSpec((ct, cin_g * k * k), lambda b, c, t: (c, 0)),
            pl.BlockSpec((k, ext), lambda b, c, t: (0, 0)),
            pl.BlockSpec((ct, 1), lambda b, c, t: (c, 0)),
        ],
        out_specs=pl.BlockSpec((1, ct, tw), lambda b, c, t: (b, c, t)),
        compiler_params=pltpu.CompilerParams(
            # All tiles are independent -> shard across TCs (v7x) freely.
            dimension_semantics=("parallel", "parallel", "parallel"),
            vmem_limit_bytes=vmem_limit),
    )(xg, wf, masks, bias)

    return out_flat.reshape(n, cout, h, w)


if __name__ == "__main__":
    key = jax.random.PRNGKey(0)
    in_channels, out_channels, ksize = 4, 8, 3
    groups = math.gcd(in_channels, out_channels)          # = 4
    n, h, w = 2, 16, 16

    k_x, k_w, k_g, k_b, k_m, k_v = jax.random.split(key, 6)
    x = jax.random.normal(k_x, (n, in_channels, h, w), jnp.float32)
    # Conv2d(in, out, k, groups=gcd, bias=False) weight: (out, in//groups, k, k)
    weight = jax.random.normal(
        k_w, (out_channels, in_channels // groups, ksize, ksize),
        jnp.float32) * 0.1
    gamma = 1.0 + 0.1 * jax.random.normal(k_g, (out_channels,), jnp.float32)
    beta = 0.1 * jax.random.normal(k_b, (out_channels,), jnp.float32)
    running_mean = 0.1 * jax.random.normal(k_m, (out_channels,), jnp.float32)
    running_var = jax.random.uniform(k_v, (out_channels,), jnp.float32, 0.5, 1.5)

    # Exercise the spatial-tiling + halo path (2 row tiles of 8 rows each) ...
    out_tiled = depthwise_separable_conv(
        x, weight, gamma, beta, running_mean, running_var, row_tile=8)
    # ... and the auto-picked tiling (single 256-lane tile at this toy size).
    out_auto = depthwise_separable_conv(
        x, weight, gamma, beta, running_mean, running_var)
    out_tiled, out_auto = jax.block_until_ready((out_tiled, out_auto))

    # Pure-JAX reference (same eval-mode BN + SiLU semantics).
    ref = jax.lax.conv_general_dilated(
        x, weight, window_strides=(1, 1),
        padding=((ksize // 2,) * 2, (ksize // 2,) * 2),
        dimension_numbers=("NCHW", "OIHW", "NCHW"),
        feature_group_count=groups,
        precision=jax.lax.Precision.HIGHEST)
    r_scale = gamma / jnp.sqrt(running_var + 1e-5)
    r_bias = beta - running_mean * r_scale
    ref = ref * r_scale[None, :, None, None] + r_bias[None, :, None, None]
    ref = ref * jax.nn.sigmoid(ref)

    assert out_tiled.shape == (n, out_channels, h, w)
    for out in (out_tiled, out_auto):
        err = float(jnp.max(jnp.abs(out - ref)))
        assert jnp.allclose(out, ref, atol=1e-4, rtol=1e-4), err
    print("KERNEL_OK")
</pallas_src>

<mosaic_0001>
module attributes {stable_mosaic.version = 11 : i64} {
  func.func @_dsconv_kernel(%arg0: i32, %arg1: i32, %arg2: i32, %arg3: memref<1x1x8x290xf32, #tpu.memory_space<vmem>>, %arg4: memref<8x9xf32, #tpu.memory_space<vmem>>, %arg5: memref<3x160xf32, #tpu.memory_space<vmem>>, %arg6: memref<8x1xf32, #tpu.memory_space<vmem>>, %arg7: memref<1x8x128xf32, #tpu.memory_space<vmem>>) attributes {dimension_semantics = [#tpu.dimension_semantics<parallel>, #tpu.dimension_semantics<parallel>, #tpu.dimension_semantics<parallel>], iteration_bounds = array<i64: 2, 1, 2>, scalar_prefetch = 0 : i64, scratch_operands = 0 : i64, tpu.core_type = #tpu.core_type<tc>, window_params = [{transform_indices = @transform_0, window_bounds = array<i64: 1, 1, 8, 290>}, {transform_indices = @transform_1, window_bounds = array<i64: 8, 9>}, {pipeline_mode = #tpu.pipeline_mode<synchronous>, transform_indices = @transform_2, window_bounds = array<i64: 3, 160>}, {transform_indices = @transform_3, window_bounds = array<i64: 8, 1>}, {transform_indices = @transform_4, window_bounds = array<i64: 1, 8, 128>}]} {
    %c128_i32 = arith.constant 128 : i32
    %0 = arith.muli %arg2, %c128_i32 : i32
    %1 = tpu.assume_multiple %0, 128 : i32
    %c0 = arith.constant 0 : index
    %c0_0 = arith.constant 0 : index
    %2 = vector.load %arg4[%c0, %c0_0] : memref<8x9xf32, #tpu.memory_space<vmem>>, vector<8x9xf32>
    %c0_1 = arith.constant 0 : index
    %c0_2 = arith.constant 0 : index
    %3 = vector.load %arg5[%c0_1, %c0_2] : memref<3x160xf32, #tpu.memory_space<vmem>>, vector<3x160xf32>
    %cst = arith.constant 0.000000e+00 : f32
    %4 = vector.broadcast %cst : f32 to vector<8x128xf32>
    %cst_3 = arith.constant 0.000000e+00 : f32
    %5 = vector.broadcast %cst_3 : f32 to vector<8x128xf32>
    %c0_4 = arith.constant 0 : index
    %c0_5 = arith.constant 0 : index
    %c0_6 = arith.constant 0 : index
    %6 = arith.index_cast %1 : i32 to index
    %7 = vector.load %arg3[%c0_4, %c0_5, %c0_6, %6] : memref<1x1x8x290xf32, #tpu.memory_space<vmem>>, vector<1x1x8x162xf32>
    %8 = vector.shape_cast %7 : vector<1x1x8x162xf32> to vector<8x162xf32>
    %9 = vector.extract_strided_slice %8 {offsets = [0, 0], sizes = [8, 160], strides = [1, 1]} : vector<8x162xf32> to vector<8x160xf32>
    %10 = vector.extract_strided_slice %3 {offsets = [0, 0], sizes = [1, 160], strides = [1, 1]} : vector<3x160xf32> to vector<1x160xf32>
    %11 = vector.broadcast %10 : vector<1x160xf32> to vector<8x160xf32>
    %12 = arith.mulf %9, %11 : vector<8x160xf32>
    %13 = vector.extract_strided_slice %8 {offsets = [0, 1], sizes = [8, 160], strides = [1, 1]} : vector<8x162xf32> to vector<8x160xf32>
    %14 = vector.extract_strided_slice %3 {offsets = [1, 0], sizes = [1, 160], strides = [1, 1]} : vector<3x160xf32> to vector<1x160xf32>
    %15 = vector.broadcast %14 : vector<1x160xf32> to vector<8x160xf32>
    %16 = arith.mulf %13, %15 : vector<8x160xf32>
    %17 = vector.extract_strided_slice %8 {offsets = [0, 2], sizes = [8, 160], strides = [1, 1]} : vector<8x162xf32> to vector<8x160xf32>
    %18 = vector.extract_strided_slice %3 {offsets = [2, 0], sizes = [1, 160], strides = [1, 1]} : vector<3x160xf32> to vector<1x160xf32>
    %19 = vector.broadcast %18 : vector<1x160xf32> to vector<8x160xf32>
    %20 = arith.mulf %17, %19 : vector<8x160xf32>
    %21 = vector.extract_strided_slice %12 {offsets = [0, 0], sizes = [8, 128], strides = [1, 1]} : vector<8x160xf32> to vector<8x128xf32>
    %22 = vector.extract_strided_slice %2 {offsets = [0, 0], sizes = [8, 1], strides = [1, 1]} : vector<8x9xf32> to vector<8x1xf32>
    %23 = vector.broadcast %22 : vector<8x1xf32> to vector<8x128xf32>
    %24 = arith.mulf %23, %21 : vector<8x128xf32>
    %25 = arith.addf %4, %24 : vector<8x128xf32>
    %26 = vector.extract_strided_slice %16 {offsets = [0, 0], sizes = [8, 128], strides = [1, 1]} : vector<8x160xf32> to vector<8x128xf32>
    %27 = vector.extract_strided_slice %2 {offsets = [0, 1], sizes = [8, 1], strides = [1, 1]} : vector<8x9xf32> to vector<8x1xf32>
    %28 = vector.broadcast %27 : vector<8x1xf32> to vector<8x128xf32>
    %29 = arith.mulf %28, %26 : vector<8x128xf32>
    %30 = arith.addf %5, %29 : vector<8x128xf32>
    %31 = vector.extract_strided_slice %20 {offsets = [0, 0], sizes = [8, 128], strides = [1, 1]} : vector<8x160xf32> to vector<8x128xf32>
    %32 = vector.extract_strided_slice %2 {offsets = [0, 2], sizes = [8, 1], strides = [1, 1]} : vector<8x9xf32> to vector<8x1xf32>
    %33 = vector.broadcast %32 : vector<8x1xf32> to vector<8x128xf32>
    %34 = arith.mulf %33, %31 : vector<8x128xf32>
    %35 = arith.addf %25, %34 : vector<8x128xf32>
    %36 = vector.extract_strided_slice %12 {offsets = [0, 16], sizes = [8, 128], strides = [1, 1]} : vector<8x160xf32> to vector<8x128xf32>
    %37 = vector.extract_strided_slice %2 {offsets = [0, 3], sizes = [8, 1], strides = [1, 1]} : vector<8x9xf32> to vector<8x1xf32>
    %38 = vector.broadcast %37 : vector<8x1xf32> to vector<8x128xf32>
    %39 = arith.mulf %38, %36 : vector<8x128xf32>
    %40 = arith.addf %30, %39 : vector<8x128xf32>
    %41 = vector.extract_strided_slice %16 {offsets = [0, 16], sizes = [8, 128], strides = [1, 1]} : vector<8x160xf32> to vector<8x128xf32>
    %42 = vector.extract_strided_slice %2 {offsets = [0, 4], sizes = [8, 1], strides = [1, 1]} : vector<8x9xf32> to vector<8x1xf32>
    %43 = vector.broadcast %42 : vector<8x1xf32> to vector<8x128xf32>
    %44 = arith.mulf %43, %41 : vector<8x128xf32>
    %45 = arith.addf %35, %44 : vector<8x128xf32>
    %46 = vector.extract_strided_slice %20 {offsets = [0, 16], sizes = [8, 128], strides = [1, 1]} : vector<8x160xf32> to vector<8x128xf32>
    %47 = vector.extract_strided_slice %2 {offsets = [0, 5], sizes = [8, 1], strides = [1, 1]} : vector<8x9xf32> to vector<8x1xf32>
    %48 = vector.broadcast %47 : vector<8x1xf32> to vector<8x128xf32>
    %49 = arith.mulf %48, %46 : vector<8x128xf32>
    %50 = arith.addf %40, %49 : vector<8x128xf32>
    %51 = vector.extract_strided_slice %12 {offsets = [0, 32], sizes = [8, 128], strides = [1, 1]} : vector<8x160xf32> to vector<8x128xf32>
    %52 = vector.extract_strided_slice %2 {offsets = [0, 6], sizes = [8, 1], strides = [1, 1]} : vector<8x9xf32> to vector<8x1xf32>
    %53 = vector.broadcast %52 : vector<8x1xf32> to vector<8x128xf32>
    %54 = arith.mulf %53, %51 : vector<8x128xf32>
    %55 = arith.addf %45, %54 : vector<8x128xf32>
    %56 = vector.extract_strided_slice %16 {offsets = [0, 32], sizes = [8, 128], strides = [1, 1]} : vector<8x160xf32> to vector<8x128xf32>
    %57 = vector.extract_strided_slice %2 {offsets = [0, 7], sizes = [8, 1], strides = [1, 1]} : vector<8x9xf32> to vector<8x1xf32>
    %58 = vector.broadcast %57 : vector<8x1xf32> to vector<8x128xf32>
    %59 = arith.mulf %58, %56 : vector<8x128xf32>
    %60 = arith.addf %50, %59 : vector<8x128xf32>
    %61 = vector.extract_strided_slice %20 {offsets = [0, 32], sizes = [8, 128], strides = [1, 1]} : vector<8x160xf32> to vector<8x128xf32>
    %62 = vector.extract_strided_slice %2 {offsets = [0, 8], sizes = [8, 1], strides = [1, 1]} : vector<8x9xf32> to vector<8x1xf32>
    %63 = vector.broadcast %62 : vector<8x1xf32> to vector<8x128xf32>
    %64 = arith.mulf %63, %61 : vector<8x128xf32>
    %65 = arith.addf %55, %64 : vector<8x128xf32>
    %66 = arith.addf %65, %60 : vector<8x128xf32>
    %c0_7 = arith.constant 0 : index
    %c0_8 = arith.constant 0 : index
    %67 = vector.load %arg6[%c0_7, %c0_8] : memref<8x1xf32, #tpu.memory_space<vmem>>, vector<8x1xf32>
    %68 = vector.broadcast %67 : vector<8x1xf32> to vector<8x128xf32>
    %69 = arith.addf %66, %68 : vector<8x128xf32>
    %70 = arith.negf %69 : vector<8x128xf32>
    %71 = math.exp %70 : vector<8x128xf32>
    %cst_9 = arith.constant 1.000000e+00 : f32
    %72 = vector.broadcast %cst_9 : f32 to vector<8x128xf32>
    %73 = arith.addf %72, %71 : vector<8x128xf32>
    %74 = arith.divf %72, %73 : vector<8x128xf32>
    %75 = arith.mulf %69, %74 : vector<8x128xf32>
    %c0_10 = arith.constant 0 : index
    %c0_11 = arith.constant 0 : index
    %c0_12 = arith.constant 0 : index
    %76 = vector.load %arg7[%c0_10, %c0_11, %c0_12] : memref<1x8x128xf32, #tpu.memory_space<vmem>>, vector<1x8x128xf32>
    %77 = vector.shape_cast %76 : vector<1x8x128xf32> to vector<8x128xf32>
    %78 = vector.shape_cast %75 : vector<8x128xf32> to vector<1x8x128xf32>
    tpu.vector_store %arg7[%c0_10, %c0_11, %c0_12], %78 {strides = array<i32>} : memref<1x8x128xf32, #tpu.memory_space<vmem>>, vector<1x8x128xf32>,
    return
  }
  func.func @transform_0(%arg0: i32, %arg1: i32, %arg2: i32) -> (i32, i32, i32, i32) {
    %c0_i32 = arith.constant 0 : i32
    %c0_i32_0 = arith.constant 0 : i32
    %c0_i32_1 = arith.constant 0 : i32
    return %arg0, %c0_i32, %arg1, %c0_i32_0 : i32, i32, i32, i32
  }
  func.func @transform_1(%arg0: i32, %arg1: i32, %arg2: i32) -> (i32, i32) {
    %c0_i32 = arith.constant 0 : i32
    %c0_i32_0 = arith.constant 0 : i32
    return %arg1, %c0_i32 : i32, i32
  }
  func.func @transform_2(%arg0: i32, %arg1: i32, %arg2: i32) -> (i32, i32) {
    %c0_i32 = arith.constant 0 : i32
    %c0_i32_0 = arith.constant 0 : i32
    %c0_i32_1 = arith.constant 0 : i32
    return %c0_i32, %c0_i32_0 : i32, i32
  }
  func.func @transform_3(%arg0: i32, %arg1: i32, %arg2: i32) -> (i32, i32) {
    %c0_i32 = arith.constant 0 : i32
    %c0_i32_0 = arith.constant 0 : i32
    return %arg1, %c0_i32 : i32, i32
  }
  func.func @transform_4(%arg0: i32, %arg1: i32, %arg2: i32) -> (i32, i32, i32) {
    %c0_i32 = arith.constant 0 : i32
    return %arg0, %arg1, %arg2 : i32, i32, i32
  }
}

</mosaic_0001>

<bundles_post_ra>
// kernel: tpu_custom_call.1
= control target key start
LH: loop header
LB: loop body
LE: loop exit
PB: predicated region body
PF: predicated region fallthrough
CT: control target
= control target key end

     0   :  { %s1283_s0 = inlined_call_operand.hbm [shape: f32[2,1,8,290], index: 0, kind: input, shape index: {}]   ;;  %s1284_s1 = inlined_call_operand.vmem [shape: f32[8,9], index: 1, kind: input, shape index: {}]   ;;  %s1285_s2 = inlined_call_operand.hbm [shape: f32[3,160], index: 2, kind: input, shape index: {}]   ;;  %s1286_s3 = inlined_call_operand.vmem [shape: f32[8,1], index: 3, kind: input, shape index: {}]   ;;  %s1287_s4 = inlined_call_operand.hbm [shape: f32[2,8,256], index: 4, kind: output, shape index: {}]  }
   0x1   :  { %1297 = sst [smem:[#allocation18_spill]] %s1285_s2 }
   0x2   :  { %1298 = sst [smem:[#allocation19_spill]] %s1287_s4 }
   0x3   :  { %9 = vsyncpa [#allocation3], 0 }
   0x4   :  { %11 = vsyncpa [#allocation3 + $0x1], 0 }
   0x5   :  { %12 = vsyncpa [#allocation6], 0 }
   0x6   :  { %13 = vsyncpa [#allocation4], 0 }
   0x7   :  { %15 = vsyncpa [#allocation4 + $0x1], 0  ;;  %s1065_s15 = smov 0   ;;  %s1067_s16 = smov 0  }
   0x8   :  { %s1069_s17 = smov 0   ;;  %s1071_s18 = smov 0  }
   0x9   :  { %s1073_s19 = smov 0   ;;  %s1075_s20 = smov 0  }
   0xa   :  { %s1077_s21 = smov 0   ;;  %s1079_s22 = smov 0  }
   0xb   :  { %s1081_s23 = smov 0   ;;  %s1083_s24 = smov 0  }
   0xc   :  { %s1085_s25 = smov 0  }
   0xd LB: > { %1299 = sst [smem:[#allocation11_spill]] %s980_s15  ;;  %s668_s26 = sadd.s32 4294967295, %s1020_s25   ;;  %s1020_s25 = sphi %s1085_s25, %s21_s25   ;;  %s1016_s24 = sphi %s1083_s24, %s1329_s24   ;;  %s1012_s23 = sphi %s1081_s23, %s1321_s23   ;;  %s1008_s22 = sphi %s1079_s22, %s1328_s22   ;;  %s1004_s21 = sphi %s1077_s21, %s1320_s21   ;;  %s1000_s20 = sphi %s1075_s20, %s1327_s20   ;;  %s996_s19 = sphi %s1073_s19, %s1326_s19   ;;  %s992_s18 = sphi %s1071_s18, %s1325_s18   ;;  %s988_s17 = sphi %s1069_s17, %s1324_s17   ;;  %s984_s16 = sphi %s1067_s16, %s1323_s16   ;;  %s980_s15 = sphi %s1065_s15, %s1319_s15  }
   0xe   : > { %1300 = sst [smem:[#allocation12_spill]] %s984_s16  ;;  %s669_s27 = sadd.s32 4294967294, %s1020_s25  }
   0xf   : > { %1301 = sst [smem:[#allocation13_spill]] %s1012_s23  ;;  %p62_p0 = scmp.ne.s32.totalorder %s996_s19, %s992_s18 }
  0x10   : > { %p1121_p1 = scmp.eq.s32.totalorder %s668_s26, 0  ;;  %p162_p2 = scmp.ne.s32.totalorder %s988_s17, %s984_s16 }
  0x11   : > { %p163_p4 = scmp.eq.s32.totalorder %s668_s26, 3  ;;  %p168_p5 = scmp.ne.s32.totalorder %s984_s16, %s980_s15 }
  0x12   : > { %p1130_p3 = por %p1121_p1, %p62_p0  ;;  %p169_p6 = scmp.eq.s32.totalorder %s669_s27, 3 }
  0x13   : > { %p1136_p7 = por %p163_p4, %p162_p2  ;;  %p670_p8 = scmp.ge.s32.totalorder %s1020_s25, 1 }
  0x14   : > { %p1141_p9 = por %p169_p6, %p168_p5  ;;  %p176_p10 = scmp.lt.s32.totalorder %s1020_s25, 5 }
  0x15   : > { %s1304_s5 = scalar_select %p1136_p7, 1, 0 }
  0x16   : > { %s1306_s6 = scalar_select %p1141_p9, 1, 0 }
  0x17   : > { %1305 = sst [smem:[#allocation14_spill]] %s1304_s5  ;;  %p1149_p11 = pnand %p670_p8, %p176_p10 }
  0x18   : > { %1307 = sst [smem:[#allocation15_spill]] %s1306_s6  ;;  %s1022_s11 = smov [#allocation5]  }
  0x19   : > { %s1308_s2 = sld [smem:[#allocation18_spill]]  ;;  %p698_p12 = pneg %p1149_p11 }
  0x1a   : > { %s197_s12 = sshll.u32 %s1022_s11, 4  ;;  %s33_s13 = sadd.s32 1, %s1012_s23  ;;  %s198_s12 = int_to_ptr.vmem [resolvable:$true] %s197_s12 }
  0x1b   : > { %p699_p13 = pnand %p698_p12, %p1121_p1  ;;  %p34_p0 = scmp.ge.s32.totalorder %s33_s13, 2 }
  0x1c   : > { %s40_s14 = sadd.s32 1, %s1016_s24  ;;  %s49_s18 = sadd.s32 1, %s1000_s20 }
  0x1d   : > { %p56_p2 = scmp.ne.s32.totalorder %s1000_s20, %s996_s19  ;;  %s1331_s13 = smov (%p34_p0, %s33_s13), 0 }
  0x1e   : > { %1310 = sst [smem:[#allocation16_spill]] %s1331_s13  ;;  %s1333_s14 = smov (!%p34_p0, %s40_s14), %s1016_s24 }
  0x1f   : > { %s195_s9 = sshll.u32 %s1308_s2, 4  ;;  %p57_p4 = scmp.eq.s32.totalorder %s1020_s25, 0  ;;  %s196_s9 = int_to_ptr.hbm [resolvable:$true] %s195_s9 }
  0x20   : > { %701 = dma.hbm_to_vmem [thread:$0]  (!%p699_p13), %s196_s9, 128, %s198_s12, [#allocation6]  }
  0x21   : > { %s148_s26 = ssub.s32 %s1012_s23, %s1331_s13  ;;  %p42_p5 = scmp.ge.s32.totalorder %s1333_s14, 2 }
  0x22   : > { %p711_p6 = scmp.lt.s32.totalorder %s1020_s25, 4  ;;  %p1169_p8 = por %p57_p4, %p56_p2 }
  0x23   : > { %s215_s7 = sand.u32 1, %s1000_s20   ;;  %s1335_s14 = smov (%p42_p5, %s1333_s14), 0 }
  0x24   : > { %1312 = sst [smem:[#allocation17_spill]] %s1335_s14  ;;  %s687_s8 = smul.u32 24, %s215_s7 }
  0x25   : > { %s44_s9 = ssub.s32 %s1016_s24, %s1335_s14  ;;  %s688_s11 = smul.u32 24, %s1016_s24 }
  0x26   : > { %p47_p10 = scmp.eq.s32.totalorder %s44_s9, 0  ;;  %s149_s12 = sor.u32 %s148_s26, %s44_s9 }
  0x27   : > { %p150_p12 = scmp.eq.s32.totalorder %s149_s12, 0  ;;  %s1313_s2 = sadd.s32 1, %s988_s17 }
  0x28   : > { %s1180_s29 = scalar_select %p47_p10, %s1000_s20, %s49_s18  }
  0x29   : > { %s1185_s13 = scalar_select %p150_p12, %s988_s17, %s1313_s2  }
  0x2a   : > { %s226_s15 = scalar_lea.hbm %s1283_s0, %s688_s11  ;;  %s219_s5 = scalar_lea.vmem [#allocation2], %s687_s8 }
  0x2b   : > { %s230_s4 = sshll.u32 %s219_s5, 4  ;;  %s228_s16 = sshll.u32 %s226_s15, 4  ;;  %s231_s4 = int_to_ptr.vmem [resolvable:$true] %s230_s4  ;;  %s229_s16 = int_to_ptr.hbm [resolvable:$true] %s228_s16 }
  0x2c   : > { %p703_p13 = pnand %p711_p6, %p1169_p8  ;;  %s216_s14 = scalar_lea.sflag [#allocation3], %s215_s7 }
  0x2d   : > { %239 = sbr.rel (%p1149_p11) target bundleno = 466 (0x1d2), region = 36  ;;  %s241_s2 = sand.u32 (!%p1149_p11), 1, %s996_s19  }
  0x2e   : > { %705 = dma.hbm_to_vmem [thread:$0]  (!%p703_p13), %s229_s16, 384, %s231_s4, %s216_s14  }
  0x2f   : > { %s1197_s18 = smul.u32 (!%p1149_p11), 24, %s241_s2  ;;  %s242_s23 = scalar_lea.sflag (!%p1149_p11), [#allocation3], %s241_s2 }
  0x31   : > { %s245_s6 = scalar_lea.vmem (!%p1149_p11), [#allocation2], %s1197_s18 }
  0x32   : > { %967 = dma.done.wait (%p1130_p3), %s242_s23, 384  }
  0x33   : > { %969 = vsyncadd (%p1130_p3), %s242_s23, 4294966912 }
  0x34   : > { %971 = dma.done.wait (%p1121_p1), [#allocation6], 128  }
  0x35   : > { %973 = vsyncadd (%p1121_p1), [#allocation6], 4294967168  ;;  %v1023_v0 = vmov 3   ;;  %v1024_v1 = vmov 7   ;;  %v1025_v2 = vmov 5   ;;  %v293_v3 = vld [vmem:[%s1284_s1] sm:$0xff] }
  0x36   : > { %820 = vset.pattern.permute.xlu1 %v1023_v0  ;;  %822 = vset.pattern.permute.xlu0 %v1024_v1  ;;  %v294_v4 = vld [vmem:[#allocation5] sm:$0x77]  ;;  %s1026_s16 = smov 2   ;;  %s1027_s28 = smov 1   ;;  %v1028_v13 = vmov 2   ;;  %v1029_v14 = vmov 1  }
  0x37   : > { %821 = vset.pattern.permute.xlu2 %v1025_v2  ;;  %378 = vperm.xlu1 %820, %v293_v3   ;;  %v328_v5 = vperm.slane %v294_v4, 2  ;;  %v310_v6 = vperm.slane %v294_v4, 1  ;;  %v311_v7 = vperm.slane %v294_v4, 5  ;;  %v329_v11 = vperm.slane %v294_v4, 6  ;;  %s679_s30 = sshll.u32 %s1004_s21, 7  ;;  %s1034_s26 = smov 113  }
  0x38   : > { %v1030_v15 = vmov 4   ;;  %v1031_v16 = vmov 6   ;;  %v1032_v17 = vmov 8   ;;  %s295_s5 = sshra.s32 %s679_s30, 7  ;;  %v1033_v18 = vmov 0   ;;  %s1035_s27 = smov 111  }
  0x39   : > { %v332_v8 = vperm.slane %v328_v5, 2  ;;  %v315_v9 = vperm.slane %v311_v7, 1  ;;  %v314_v10 = vperm.slane %v310_v6, 1  ;;  %v333_v12 = vperm.slane %v329_v11, 2  ;;  %s680_s10 = sshll.u32 %s295_s5, 3  ;;  %s1036_s7 = smov 96  }
  0x3a   : > { %v302_v19 = vperm.slane %v294_v4, 0  ;;  %v303_v20 = vperm.slane %v294_v4, 4  ;;  %s298_s14 = scalar_lea.vmem %s245_s6, %s680_s10 [#allocation2]  ;;  %vm340_vm0 = vcmask 15360   ;;  %vm322_vm1 = vcmask 7168   ;;  %s1037_s8 = smov 126   ;;  %v487_v60 = vld [vmem:[%s1286_s3] sm:$0xff] }
  0x3b   : > { %336 = vrot.lane.b32.xlu0 %v332_v8, %s1026_s16  ;;  %320 = vrot.lane.b32.xlu2 %v315_v9, %s1027_s28  ;;  %v299_v23 = vld [vmem:[%s298_s14] sm:$0xff]  ;;  %v300_v24 = vld [vmem:[%s298_s14 + $0x8] sm:$0xff]  ;;  %s1038_s9 = smov 94   ;;  %vm389_vm2 = vcmask 924672   ;;  %vm407_vm3 = vcmask 908288   ;;  %vm440_vm4 = vcmask 785408  }
  0x3c   : > { %v306_v21 = vperm.slane %v302_v19, 0  ;;  %v307_v22 = vperm.slane %v303_v20, 0  ;;  %s1039_s2 = smov 127   ;;  %vm373_vm5 = vcmask 1031168   ;;  %vm473_vm6 = vcmask 769024   ;;  %s1314_s18 = sld [smem:[#allocation12_spill]] }
  0x3d   : > { %vm483_vm7 = vcmask 1039360   ;;  %s683_s23 = sshll.u32 %s1008_s22, 1  ;;  %s1315_s5 = sld [smem:[#allocation19_spill]] }
  0x3e   : > { %v1214_v25 = vmul.f32 %v306_v21, %v299_v23  ;;  %v309_v26 = vmul.f32 %v307_v22, %v300_v24  ;;  %s528_s4 = sadd.s32 %s1004_s21, %s683_s23 }
  0x3f   : > { %318 = vrot.lane.b32.xlu1 %v314_v10, %s1027_s28 }
  0x40   : > { %823 = vset.pattern.permute.xlu1 %v1028_v13 }
  0x42   : > { %s281_s6 = sand.u32 1, %s1314_s18  }
  0x43   : > { %338 = vrot.lane.b32.xlu0 %v333_v12, %s1026_s16  ;;  %412 = vperm.xlu2 %821, %v293_v3   ;;  %s678_s15 = sshll.u32 %s281_s6, 3  ;;  %s684_s16 = sshll.u32 %s528_s4, 3 }
  0x44   : > { %s530_s10 = scalar_lea.hbm %s1315_s5, %s684_s16  ;;  %s283_s14 = scalar_lea.vmem [#allocation7], %s678_s15 }
  0x45   : > { %s532_s21 = sshll.u32 %s283_s14, 4  ;;  %s914_s12 = scalar_lea.hbm %s1315_s5, 32  ;;  %s533_s21 = int_to_ptr.vmem [resolvable:$true] %s532_s21 }
  0x47   : > { %362 = vperm.xlu1 %823, %v293_v3  }
  0x4b   : > { %445 = vperm.xlu0 %822, %v293_v3   ;;  %824 = vset.pattern.permute.xlu2 %v1029_v14 }
  0x4c   : > { %354 = vperm.xlu2 %824, %v293_v3  }
  0x4f   : > { %825 = vset.pattern.permute.xlu1 %v1030_v15 }
  0x50   : > { %396 = vperm.xlu1 %825, %v293_v3  }
  0x53   : > { %829 = vset.pattern.permute.xlu0 %v1033_v18 }
  0x58   : > { %826 = vset.pattern.permute.xlu1 %v1031_v16 }
  0x59   : > { %429 = vperm.xlu1 %826, %v293_v3  }
  0x61   : > { %827 = vset.pattern.permute.xlu1 %v1032_v17 }
  0x62   : > { %462 = vperm.xlu1 %827, %v293_v3  }
  0x6a   : > { %828 = vset.pattern.permute.xlu1 %v1033_v18 }
  0x6b   : > { %348 = vperm.xlu1 %828, %v293_v3  }
  0x95   : > { %v321_v27 = vpop.permute.xlu2 %320 }
  0x9d   : > { %v413_v33 = vpop.permute.xlu2 %412 }
  0xa6   : > { %v355_v58 = vpop.permute.xlu2 %354 }
  0xa9   : > { %v379_v28 = vpop.permute.xlu1 %378 }
  0xaa   : > { %v381_v29 = vmul.f32 %v379_v28, %v1214_v25  ;;  %v382_v30 = vmul.f32 %v379_v28, %v309_v26 }
  0xac   : > { %387 = vrot.lane.b32.xlu0 %v382_v30, %s1034_s26  ;;  %385 = vrot.lane.b32.xlu2 %v381_v29, %s1034_s26  ;;  %s534_s26 = sshll.u32 %s530_s10, 4  ;;  %s535_s26 = int_to_ptr.hbm [resolvable:$true] %s534_s26 }
  0xad   : > { %v337_v31 = vpop.permute.xlu0 %336 }
  0xae   : > { %v344_v32 = vmul.f32 %v337_v31, %v299_v23 }
  0xb0   : > { %v415_v35 = vmul.f32 %v413_v33, %v344_v32 }
  0xb1   : > { %v319_v34 = vpop.permute.xlu1 %318 }
  0xb2   : > { %v326_v41 = vmul.f32 %v319_v34, %v299_v23  ;;  %v323_v42 = vsel %vm322_vm1, %v319_v34, %v321_v27 }
  0xb3   : > { %v327_v45 = vmul.f32 %v323_v42, %v300_v24 }
  0xb4   : > { %419 = vrot.lane.b32.xlu2 %v415_v35, %s1035_s27  ;;  %v357_v3 = vmul.f32 %v355_v58, %v326_v41 }
  0xb5   : > { %v339_v36 = vpop.permute.xlu0 %338  ;;  %v358_v1 = vmul.f32 %v355_v58, %v327_v45 }
  0xb6   : > { %v341_v37 = vsel %vm340_vm0, %v337_v31, %v339_v36 }
  0xb7   : > { %v345_v38 = vmul.f32 %v341_v37, %v300_v24 }
  0xb9   : > { %v363_v39 = vpop.permute.xlu1 %362  ;;  %v416_v40 = vmul.f32 %v413_v33, %v345_v38 }
  0xba   : > { %v365_v49 = vmul.f32 %v363_v39, %v344_v32  ;;  %v366_v53 = vmul.f32 %v363_v39, %v345_v38 }
  0xbb   : > { %421 = vrot.lane.b32.xlu0 %v416_v40, %s1035_s27 }
  0xbd   : > { %v446_v43 = vpop.permute.xlu0 %445 }
  0xbe   : > { %v448_v44 = vmul.f32 %v446_v43, %v326_v41  ;;  %v449_v46 = vmul.f32 %v446_v43, %v327_v45 }
  0xc0   : > { %452 = vrot.lane.b32.xlu2 %v448_v44, %s1036_s7 }
  0xc2   : > { %v397_v47 = vpop.permute.xlu1 %396 }
  0xc3   : > { %v399_v48 = vmul.f32 %v397_v47, %v326_v41  ;;  %454 = vrot.lane.b32.xlu0 %v449_v46, %s1036_s7  ;;  %v400_v57 = vmul.f32 %v397_v47, %v327_v45 }
  0xc5   : > { %403 = vrot.lane.b32.xlu1 %v399_v48, %s1035_s27 }
  0xc8   : > { %369 = vrot.lane.b32.xlu2 %v365_v49, %s1037_s8 }
  0xcb   : > { %v430_v50 = vpop.permute.xlu1 %429 }
  0xcc   : > { %v432_v51 = vmul.f32 %v430_v50, %v1214_v25  ;;  %v433_v52 = vmul.f32 %v430_v50, %v309_v26 }
  0xce   : > { %436 = vrot.lane.b32.xlu0 %v432_v51, %s1036_s7  ;;  %438 = vrot.lane.b32.xlu1 %v433_v52, %s1036_s7  ;;  %s908_s7 = sshra.s32 %s535_s26, 4  ;;  %s909_s7 = int_to_ptr.hbm [resolvable:$true] %s908_s7 }
  0xcf   : > { %p915_p0 = scmp.lt.s32.totalorder %s909_s7, %s1315_s5 }
  0xd4   : > { %v463_v54 = vpop.permute.xlu1 %462 }
  0xd5   : > { %v465_v55 = vmul.f32 %v463_v54, %v344_v32  ;;  %v466_v56 = vmul.f32 %v463_v54, %v345_v38 }
  0xd6   : > { %371 = vrot.lane.b32.xlu0 %v366_v53, %s1037_s8  ;;  %s910_s8 = scalar_lea.hbm %s909_s7, 8 }
  0xd7   : > { %469 = vrot.lane.b32.xlu2 %v465_v55, %s1038_s9  ;;  %p911_p1 = scmp.ne.s32.totalorder %s909_s7, %s910_s8  ;;  %p916_p2 = scmp.lt.s32.totalorder %s914_s12, %s910_s8 }
  0xd9   : > { %p912_p3 = pnand %p911_p1, %p1136_p7  ;;  %p917_p4 = por %p916_p2, %p915_p0 }
  0xdb   : > { %p913_p11 = pneg %p912_p3 }
  0xdd   : > { %v349_v11 = vpop.permute.xlu1 %348  ;;  %p918_p5 = pnand %p917_p4, %p913_p11 }
  0xde   : > { %471 = vrot.lane.b32.xlu0 %v466_v56, %s1038_s9  ;;  %v351_v18 = vmul.f32 %v349_v11, %v1214_v25 }
  0xdf   : > { %405 = vrot.lane.b32.xlu2 %v400_v57, %s1035_s27  ;;  %s516_s27 = scalar_lea.sflag [#allocation4], %s281_s6 }
  0xe6   : > { %490 = vperm.xlu0 %829, %v487_v60  }
 0x106   : > { %v386_v59 = vpop.permute.xlu2 %385 }
 0x10e   : > { %v420_v61 = vpop.permute.xlu2 %419 }
 0x11a   : > { %v453_v63 = vpop.permute.xlu2 %452 }
 0x11e   : > { %v388_v62 = vpop.permute.xlu0 %387 }
 0x11f   : > { %v390_v2 = vsel %vm389_vm2, %v386_v59, %v388_v62  ;;  %v394_v4 = vadd.f32 %v388_v62, %v358_v1 }
 0x120   : > { %v393_v6 = vadd.f32 %v390_v2, %v357_v3 }
 0x122   : > { %v370_v8 = vpop.permute.xlu2 %369 }
 0x12d   : > { %v422_v0 = vpop.permute.xlu0 %421 }
 0x12e   : > { %v423_v5 = vsel %vm407_vm3, %v420_v61, %v422_v0  ;;  %v427_v7 = vadd.f32 %v422_v0, %v394_v4 }
 0x12f   : > { %v426_v9 = vadd.f32 %v423_v5, %v393_v6 }
 0x131   : > { %v470_v15 = vpop.permute.xlu2 %469 }
 0x135   : > { %v455_v10 = vpop.permute.xlu0 %454 }
 0x136   : > { %v456_v12 = vsel %vm440_vm4, %v453_v63, %v455_v10  ;;  %v460_v13 = vadd.f32 %v455_v10, %v427_v7 }
 0x137   : > { %v459_v14 = vadd.f32 %v456_v12, %v426_v9  ;;  %v404_v16 = vpop.permute.xlu1 %403 }
 0x138   : > { %481 = vrot.lane.b32.xlu2 %v460_v13, %s1039_s2 }
 0x139   : > { %479 = vrot.lane.b32.xlu1 %v459_v14, %s1039_s2  ;;  %v406_v19 = vpop.permute.xlu2 %405 }
 0x13a   : > { %v408_v24 = vsel %vm407_vm3, %v404_v16, %v406_v19 }
 0x140   : > { %v437_v17 = vpop.permute.xlu0 %436  ;;  %v439_v21 = vpop.permute.xlu1 %438 }
 0x141   : > { %v441_v26 = vsel %vm440_vm4, %v437_v17, %v439_v21 }
 0x148   : > { %v372_v20 = vpop.permute.xlu0 %371 }
 0x149   : > { %v374_v22 = vsel %vm373_vm5, %v370_v8, %v372_v20 }
 0x14a   : > { %v376_v23 = vadd.f32 %v374_v22, %v351_v18 }
 0x14c   : > { %v410_v27 = vadd.f32 %v408_v24, %v376_v23 }
 0x14e   : > { %v443_v28 = vadd.f32 %v441_v26, %v410_v27 }
 0x150   : > { %v472_v29 = vpop.permute.xlu0 %471 }
 0x151   : > { %v474_v30 = vsel %vm473_vm6, %v470_v15, %v472_v29 }
 0x152   : > { %v476_v25 = vadd.f32 %v474_v30, %v443_v28 }
 0x158   : > { %v491_v34 = vpop.permute.xlu0 %490 }
 0x192   : > { %v482_v31 = vpop.permute.xlu2 %481 }
 0x1ab   : > { %v480_v32 = vpop.permute.xlu1 %479 }
 0x1ac   : > { %v484_v33 = vsel %vm483_vm7, %v480_v32, %v482_v31 }
 0x1ad   : > { %v486_v35 = vadd.f32 %v484_v33, %v476_v25 }
 0x1af   : > { %v493_v36 = vadd.f32 %v491_v34, %v486_v35 }
 0x1b1   : > { %v681_v37 = vmul.f32 -1.442695, %v493_v36 }
 0x1b3   : > { %830 = vpow2.f32 %v681_v37 }
 0x1b9   : > { %v831_v38 = vpop.eup %830 }
 0x1ba   : > { %v497_v39 = vadd.f32 1.0, %v831_v38 }
 0x1bc   : > { %832 = vrcp.f32 %v497_v39  ;;  %v509_v43 = vand.u32 2147483648, %v497_v39  ;;  %v507_v45 = vand.u32 2147483647, %v497_v39  ;;  %vm503_vm9 = vweird.f32 %v497_v39 }
 0x1be   : > { %v510_v47 = vor.u32 1.1754944e-38, %v509_v43  ;;  %vm508_vm11 = vcmp.eq.f32.partialorder %v507_v45, 8.507059e+37 }
 0x1c2   : > { %v833_v40 = vpop.eup %832 }
 0x1c3   : > { %v499_v41 = vmul.f32 %v833_v40, %v497_v39  ;;  %vm504_vm8 = vweird.f32 %v833_v40 }
 0x1c4   : > { %vm505_vm10 = vmor %vm503_vm9, %vm504_vm8 }
 0x1c5   : > { %v500_v42 = vsub.f32 1.0, %v499_v41 }
 0x1c7   : > { %v501_v44 = vmul.f32 %v833_v40, %v500_v42 }
 0x1c9   : > { %v502_v46 = vadd.f32 %v833_v40, %v501_v44 }
 0x1cb   : > { %v506_v48 = vsel %vm505_vm10, %v833_v40, %v502_v46 }
 0x1cc   : > { %v511_v49 = vsel %vm508_vm11, %v510_v47, %v506_v48 }
 0x1cd   : > { %v513_v50 = vmul.f32 %v511_v49, %v493_v36 }
 0x1cf   : > { %514 = vst [vmem:[%s283_s14] sm:$0xff] %v513_v50 }
 0x1d0   : > { %921 = shalt.err (!%p918_p5)
}
 0x1d1   : > { %696 = dma.vmem_to_hbm [thread:$0]  (%p1136_p7), %s533_s21, 128, %s535_s26, %s516_s27  }
 0x1d2 PF: > { %s1317_s23 = sld [smem:[#allocation11_spill]]  ;;  %p713_p6 = scmp.ge.s32.totalorder %s1020_s25, 2 }
 0x1d4   : > { %p707_p8 = pnand %p713_p6, %p1141_p9 }
 0x1d6   : > { %p708_p10 = pneg %p707_p8 }
 0x1d8   : > { %s546_s4 = sand.u32 1, %s1317_s23  }
 0x1d9   : > { %s547_s15 = scalar_lea.sflag [#allocation4], %s546_s4 }
 0x1da   : > { %975 = dma.done.wait (%p708_p10), %s547_s15, 128  }
 0x1db   : > { %977 = vsyncadd (%p708_p10), %s547_s15, 4294967168  ;;  %s21_s25 = sadd.s32 1, %s1020_s25   ;;  %s1319_s15 = sld [smem:[#allocation12_spill]] }
 0x1dc   : > { %p18_p12 = scmp.ge.s32.totalorder %s21_s25, 6   ;;  %s1320_s21 = sld [smem:[#allocation13_spill]] }
 0x1dd   : > { %s1321_s23 = sld [smem:[#allocation16_spill]]  ;;  %s1323_s16 = smov %s988_s17 }
 0x1de   : > { %s1322_s28 = sld [smem:[#allocation17_spill]]  ;;  %s1324_s17 = smov %s1185_s13 }
 0x1df   : > { %s1325_s18 = smov %s996_s19  ;;  %s1326_s19 = smov %s1000_s20 }
 0x1e0   : > { %s1327_s20 = smov %s1180_s29  ;;  %s1328_s22 = smov %s1016_s24 }
 0x1e1   :  { %20 = sbr.rel (!%p18_p12) target bundleno = 13 (0xd), region = 92 }
 0x1e4   : > { %s1329_s24 = smov %s1322_s28 }
 0x1e6   :  { %553 = vsyncpa [#allocation3], 1 }
 0x1e7   :  { %555 = vsyncpa [#allocation3 + $0x1], 1 }
 0x1e8   :  { %556 = vsyncpa [#allocation6], 1 }
 0x1e9   :  { %557 = vsyncpa [#allocation4], 1 }
 0x1ea   :  { %559 = vsyncpa [#allocation4 + $0x1], 1 }

</bundles_post_ra>
